<compile_context>
chip_gen: v7x
topology: tpu7x:2x2x1
jax: 0.10.0
libtpu: 0.0.40
codegen_flags: <defaults>
</compile_context>

<pallas_src>
import functools
import math

import jax
import jax.numpy as jnp
from jax import lax
from jax.experimental import pallas as pl
from jax.experimental.pallas import tpu as pltpu


def _attention_kernel(x_ref, wqkv_ref, bqkv_ref, wo_ref, bo_ref,
                      out_ref, probs_ref, *, spatial):
    # x_ref block: (1, p*n, c), rows ordered n-major / p-minor.
    _, pn, c = x_ref.shape
    x = x_ref[0].astype(jnp.bfloat16)                                  # (pn, c)

    # Fused QKV projection: one (pn, c) @ (c, 3c) MXU push, f32 accumulation,
    # f32 bias added after accumulation.
    qkv = jnp.dot(x, wqkv_ref[...],
                  preferred_element_type=jnp.float32) + bqkv_ref[...]  # (pn, 3c)
    q = qkv[:, :c].astype(jnp.bfloat16)
    k = qkv[:, c:2 * c].astype(jnp.bfloat16)
    v = qkv[:, 2 * c:].astype(jnp.bfloat16)

    # Dense (pn, pn) scores: one (128,32)x(32,128) MXU matmul.
    scale = jnp.float32(1.0 / math.sqrt(float(c)))
    scores = jnp.dot(q, k.T, preferred_element_type=jnp.float32) * scale

    # Striped mask: rows/cols belong to the same spatial slot iff equal mod p.
    # Mask BEFORE the row max so exp() of off-stripe entries is exactly 0.
    rows = lax.broadcasted_iota(jnp.int32, (pn, pn), 0)
    cols = lax.broadcasted_iota(jnp.int32, (pn, pn), 1)
    same_slot = (rows % spatial) == (cols % spatial)
    scores = jnp.where(same_slot, scores, jnp.float32(-1e30))

    # Numerically stable softmax, all in f32 (exp lives on the EUP).
    m = jnp.max(scores, axis=-1, keepdims=True)
    e = jnp.exp(scores - m)
    denom = jnp.sum(e, axis=-1, keepdims=True)
    probs = e / denom                                                  # (pn, pn)

    # Lane-dense (128-wide) store of the attention weights.
    probs_ref[0] = probs.astype(probs_ref.dtype)

    # TODO(synk): attn_dropout / proj_dropout are identity here (inference mode).
    ctx = jnp.dot(probs.astype(jnp.bfloat16), v,
                  preferred_element_type=jnp.float32)                  # (pn, c)
    out = jnp.dot(ctx.astype(jnp.bfloat16), wo_ref[...],
                  preferred_element_type=jnp.float32) + bo_ref[...]    # (pn, c)
    out_ref[0] = out.astype(out_ref.dtype)


def attention_forward(hidden_states, params, *, hight, width):
    """hidden_states: (b, n, h, w, c) float32.  Returns (attn_out, weights)."""
    b, n, h, w, c = hidden_states.shape
    assert h == hight and w == width
    p = h * w
    pn = p * n

    # Free reshape (no transpose): rows ordered (n outer, p inner).
    x = hidden_states.reshape(b, pn, c)

    # Fuse Q/K/V weights into one (c, 3c) matmul; matmul weights in bf16,
    # biases stay f32 (added after f32 accumulation).
    wqkv = jnp.concatenate([params["wq"], params["wk"], params["wv"]],
                           axis=1).astype(jnp.bfloat16)
    bqkv = jnp.concatenate([params["bq"], params["bk"], params["bv"]], axis=1)
    wo = params["wo"].astype(jnp.bfloat16)
    bo = params["bo"]

    kernel = functools.partial(_attention_kernel, spatial=p)

    out, probs_full = pl.pallas_call(
        kernel,
        out_shape=(
            jax.ShapeDtypeStruct((b, pn, c), hidden_states.dtype),
            jax.ShapeDtypeStruct((b, pn, pn), jnp.float32),
        ),
        grid=(b,),
        in_specs=[
            pl.BlockSpec((1, pn, c), lambda bi: (bi, 0, 0)),     # activations
            pl.BlockSpec((c, 3 * c), lambda bi: (0, 0)),         # fused wqkv (bf16)
            pl.BlockSpec((1, 3 * c), lambda bi: (0, 0)),         # fused bqkv (f32)
            pl.BlockSpec((c, c), lambda bi: (0, 0)),             # out-proj w (bf16)
            pl.BlockSpec((1, c), lambda bi: (0, 0)),             # out-proj b (f32)
        ],
        out_specs=(
            pl.BlockSpec((1, pn, c), lambda bi: (bi, 0, 0)),
            pl.BlockSpec((1, pn, pn), lambda bi: (bi, 0, 0)),    # lane-dense probs
        ),
        compiler_params=pltpu.CompilerParams(
            dimension_semantics=("parallel",)),                  # 2 steps -> 2 TCs on v7x
    )(x, wqkv, bqkv, wo, bo)

    # Output rows already in (n, p) order -> direct reshape, no transpose.
    attn_out = out.reshape(b, n, h, w, c)

    # Extract the per-spatial-slot (n, n) diagonal blocks of the striped probs.
    weights = jnp.diagonal(probs_full.reshape(b, n, p, n, p), axis1=2, axis2=4)
    weights = weights.transpose(0, 3, 1, 2)                       # (b, p, n, n)
    return attn_out, weights


def _init_params(key, c):
    ks = jax.random.split(key, 8)
    bound = 1.0 / math.sqrt(c)

    def lin(kw, kb):
        # PyTorch Linear: weight (out, in); we store transposed (in, out).
        w = jax.random.uniform(kw, (c, c), jnp.float32, -bound, bound).T
        bvec = jax.random.uniform(kb, (1, c), jnp.float32, -bound, bound)
        return w, bvec

    wq, bq = lin(ks[0], ks[1])
    wk, bk = lin(ks[2], ks[3])
    wv, bv = lin(ks[4], ks[5])
    wo, bo = lin(ks[6], ks[7])
    return dict(wq=wq, bq=bq, wk=wk, bk=bk, wv=wv, bv=bv, wo=wo, bo=bo)


def _reference(hidden_states, params, *, hight, width):
    """Pure-JAX f32 reference mirroring the PyTorch forward (dropout=identity)."""
    b, n, h, w, c = hidden_states.shape
    p = h * w

    def proj(x, wname, bname):
        return jnp.einsum("bnhwc,cd->bnhwd", x, params[wname]) + params[bname][0]

    q = proj(hidden_states, "wq", "bq").reshape(b, n, p, c).transpose(0, 2, 1, 3)
    k = proj(hidden_states, "wk", "bk").reshape(b, n, p, c).transpose(0, 2, 1, 3)
    v = proj(hidden_states, "wv", "bv").reshape(b, n, p, c).transpose(0, 2, 1, 3)

    scores = jnp.einsum("bpnc,bpmc->bpnm", q, k) / math.sqrt(c)
    probs = jax.nn.softmax(scores, axis=-1)
    ctx = jnp.einsum("bpnm,bpmc->bpnc", probs, v)
    ctx = ctx.transpose(0, 2, 1, 3).reshape(b, n, hight, width, c)
    out = jnp.einsum("bnhwc,cd->bnhwd", ctx, params["wo"]) + params["bo"][0]
    return out, probs


if __name__ == "__main__":
    # small shapes consistent with the module: (b, n, h, w, c)
    B, N, H, W, C = 2, 8, 4, 4, 32
    key = jax.random.PRNGKey(0)
    k_x, k_p = jax.random.split(key)

    x = jax.random.normal(k_x, (B, N, H, W, C), jnp.float32)
    params = _init_params(k_p, C)

    out, weights = attention_forward(x, params, hight=H, width=W)
    out = jax.block_until_ready(out)
    weights = jax.block_until_ready(weights)

    ref_out, ref_w = _reference(x, params, hight=H, width=W)
    assert out.shape == (B, N, H, W, C)
    assert weights.shape == (B, H * W, N, N)
    # bf16 MXU operands (f32 accumulation) vs f32 reference -> loosened tolerance
    assert jnp.allclose(out, ref_out, rtol=2e-2, atol=2e-2)
    assert jnp.allclose(weights, ref_w, rtol=2e-2, atol=2e-2)

    print("KERNEL_OK")
</pallas_src>

<mosaic_0001>
module attributes {stable_mosaic.version = 11 : i64} {
  func.func @_attention_kernel(%arg0: i32, %arg1: memref<1x128x32xf32, #tpu.memory_space<vmem>>, %arg2: memref<32x96xbf16, #tpu.memory_space<vmem>>, %arg3: memref<1x96xf32, #tpu.memory_space<vmem>>, %arg4: memref<32x32xbf16, #tpu.memory_space<vmem>>, %arg5: memref<1x32xf32, #tpu.memory_space<vmem>>, %arg6: memref<1x128x32xf32, #tpu.memory_space<vmem>>, %arg7: memref<1x128x128xf32, #tpu.memory_space<vmem>>) attributes {dimension_semantics = [#tpu.dimension_semantics<parallel>], iteration_bounds = array<i64: 2>, scalar_prefetch = 0 : i64, scratch_operands = 0 : i64, tpu.core_type = #tpu.core_type<tc>, window_params = [{transform_indices = @transform_0, window_bounds = array<i64: 1, 128, 32>}, {pipeline_mode = #tpu.pipeline_mode<synchronous>, transform_indices = @transform_1, window_bounds = array<i64: 32, 96>}, {pipeline_mode = #tpu.pipeline_mode<synchronous>, transform_indices = @transform_2, window_bounds = array<i64: 1, 96>}, {pipeline_mode = #tpu.pipeline_mode<synchronous>, transform_indices = @transform_3, window_bounds = array<i64: 32, 32>}, {pipeline_mode = #tpu.pipeline_mode<synchronous>, transform_indices = @transform_4, window_bounds = array<i64: 1, 32>}, {transform_indices = @transform_5, window_bounds = array<i64: 1, 128, 32>}, {transform_indices = @transform_6, window_bounds = array<i64: 1, 128, 128>}]} {
    %c0 = arith.constant 0 : index
    %c0_0 = arith.constant 0 : index
    %c0_1 = arith.constant 0 : index
    %0 = vector.load %arg1[%c0, %c0_0, %c0_1] : memref<1x128x32xf32, #tpu.memory_space<vmem>>, vector<1x128x32xf32>
    %1 = vector.shape_cast %0 : vector<1x128x32xf32> to vector<128x32xf32>
    %2 = arith.truncf %1 : vector<128x32xf32> to vector<128x32xbf16>
    %c0_2 = arith.constant 0 : index
    %c0_3 = arith.constant 0 : index
    %3 = vector.load %arg2[%c0_2, %c0_3] : memref<32x96xbf16, #tpu.memory_space<vmem>>, vector<32x96xbf16>
    %cst = arith.constant dense<0.000000e+00> : vector<128x96xf32>
    %4 = tpu.matmul %2, %3, %cst {dimension_numbers = #tpu.dot_dimension_numbers<[1], [0], [0], [1], [0, 0, 1, 1], [], []>} : vector<128x32xbf16>, vector<32x96xbf16>, vector<128x96xf32> -> vector<128x96xf32>
    %c0_4 = arith.constant 0 : index
    %c0_5 = arith.constant 0 : index
    %5 = vector.load %arg3[%c0_4, %c0_5] : memref<1x96xf32, #tpu.memory_space<vmem>>, vector<1x96xf32>
    %6 = vector.broadcast %5 : vector<1x96xf32> to vector<128x96xf32>
    %7 = arith.addf %4, %6 : vector<128x96xf32>
    %8 = vector.extract_strided_slice %7 {offsets = [0, 0], sizes = [128, 32], strides = [1, 1]} : vector<128x96xf32> to vector<128x32xf32>
    %9 = arith.truncf %8 : vector<128x32xf32> to vector<128x32xbf16>
    %10 = vector.extract_strided_slice %7 {offsets = [0, 32], sizes = [128, 32], strides = [1, 1]} : vector<128x96xf32> to vector<128x32xf32>
    %11 = arith.truncf %10 : vector<128x32xf32> to vector<128x32xbf16>
    %12 = vector.extract_strided_slice %7 {offsets = [0, 64], sizes = [128, 32], strides = [1, 1]} : vector<128x96xf32> to vector<128x32xf32>
    %13 = arith.truncf %12 : vector<128x32xf32> to vector<128x32xbf16>
    %14 = tpu.transpose %11, [1, 0] : vector<128x32xbf16> -> vector<32x128xbf16>
    %cst_6 = arith.constant dense<0.000000e+00> : vector<128x128xf32>
    %15 = tpu.matmul %9, %14, %cst_6 {dimension_numbers = #tpu.dot_dimension_numbers<[1], [0], [0], [1], [0, 0, 1, 1], [], []>} : vector<128x32xbf16>, vector<32x128xbf16>, vector<128x128xf32> -> vector<128x128xf32>
    %cst_7 = arith.constant 0.176776692 : f32
    %16 = vector.broadcast %cst_7 : f32 to vector<128x128xf32>
    %17 = arith.mulf %15, %16 : vector<128x128xf32>
    %18 = tpu.iota {dimensions = array<i32: 0>} : vector<128x128xi32>
    %19 = tpu.iota {dimensions = array<i32: 1>} : vector<128x128xi32>
    %c16_i32 = arith.constant 16 : i32
    %c0_i32 = arith.constant 0 : i32
    %20 = arith.cmpi eq, %c16_i32, %c0_i32 : i32
    %c1_i32 = arith.constant 1 : i32
    %21 = arith.select %20, %c1_i32, %c16_i32 : i32
    %22 = vector.broadcast %21 : i32 to vector<128x128xi32>
    %23 = arith.remsi %18, %22 : vector<128x128xi32>
    %c0_i32_8 = arith.constant 0 : i32
    %24 = vector.broadcast %c0_i32_8 : i32 to vector<128x128xi32>
    %25 = arith.cmpi ne, %23, %24 : vector<128x128xi32>
    %c0_i32_9 = arith.constant 0 : i32
    %26 = vector.broadcast %c0_i32_9 : i32 to vector<128x128xi32>
    %27 = arith.cmpi slt, %23, %26 : vector<128x128xi32>
    %c0_i32_10 = arith.constant 0 : i32
    %28 = arith.cmpi slt, %21, %c0_i32_10 : i32
    %29 = vector.broadcast %28 : i1 to vector<128x128xi1>
    %30 = vector.broadcast %29 : vector<128x128xi1> to vector<128x128xi1>
    %31 = arith.xori %27, %30 : vector<128x128xi1>
    %32 = arith.andi %31, %25 : vector<128x128xi1>
    %33 = vector.broadcast %21 : i32 to vector<128x128xi32>
    %34 = arith.addi %23, %33 : vector<128x128xi32>
    %35 = arith.select %32, %34, %23 : vector<128x128xi1>, vector<128x128xi32>
    %c16_i32_11 = arith.constant 16 : i32
    %c0_i32_12 = arith.constant 0 : i32
    %36 = arith.cmpi eq, %c16_i32_11, %c0_i32_12 : i32
    %c1_i32_13 = arith.constant 1 : i32
    %37 = arith.select %36, %c1_i32_13, %c16_i32_11 : i32
    %38 = vector.broadcast %37 : i32 to vector<128x128xi32>
    %39 = arith.remsi %19, %38 : vector<128x128xi32>
    %c0_i32_14 = arith.constant 0 : i32
    %40 = vector.broadcast %c0_i32_14 : i32 to vector<128x128xi32>
    %41 = arith.cmpi ne, %39, %40 : vector<128x128xi32>
    %c0_i32_15 = arith.constant 0 : i32
    %42 = vector.broadcast %c0_i32_15 : i32 to vector<128x128xi32>
    %43 = arith.cmpi slt, %39, %42 : vector<128x128xi32>
    %c0_i32_16 = arith.constant 0 : i32
    %44 = arith.cmpi slt, %37, %c0_i32_16 : i32
    %45 = vector.broadcast %44 : i1 to vector<128x128xi1>
    %46 = vector.broadcast %45 : vector<128x128xi1> to vector<128x128xi1>
    %47 = arith.xori %43, %46 : vector<128x128xi1>
    %48 = arith.andi %47, %41 : vector<128x128xi1>
    %49 = vector.broadcast %37 : i32 to vector<128x128xi32>
    %50 = arith.addi %39, %49 : vector<128x128xi32>
    %51 = arith.select %48, %50, %39 : vector<128x128xi1>, vector<128x128xi32>
    %52 = arith.cmpi eq, %35, %51 : vector<128x128xi32>
    %cst_17 = arith.constant -1.000000e+30 : f32
    %53 = vector.broadcast %cst_17 : f32 to vector<128x128xf32>
    %54 = arith.select %52, %17, %53 : vector<128x128xi1>, vector<128x128xf32>
    %cst_18 = arith.constant dense<0xFF800000> : vector<128xf32>
    %55 = vector.multi_reduction <maximumf>, %54, %cst_18 [1] : vector<128x128xf32> to vector<128xf32>
    %56 = vector.shape_cast %55 : vector<128xf32> to vector<128x1xf32>
    %57 = vector.broadcast %56 : vector<128x1xf32> to vector<128x128xf32>
    %58 = arith.subf %54, %57 : vector<128x128xf32>
    %59 = math.exp %58 : vector<128x128xf32>
    %cst_19 = arith.constant dense<0.000000e+00> : vector<128xf32>
    %60 = vector.multi_reduction <add>, %59, %cst_19 [1] : vector<128x128xf32> to vector<128xf32>
    %61 = vector.shape_cast %60 : vector<128xf32> to vector<128x1xf32>
    %62 = vector.broadcast %61 : vector<128x1xf32> to vector<128x128xf32>
    %63 = arith.divf %59, %62 : vector<128x128xf32>
    %c0_20 = arith.constant 0 : index
    %c0_21 = arith.constant 0 : index
    %c0_22 = arith.constant 0 : index
    %64 = vector.load %arg7[%c0_20, %c0_21, %c0_22] : memref<1x128x128xf32, #tpu.memory_space<vmem>>, vector<1x128x128xf32>
    %65 = vector.shape_cast %64 : vector<1x128x128xf32> to vector<128x128xf32>
    %66 = vector.shape_cast %63 : vector<128x128xf32> to vector<1x128x128xf32>
    tpu.vector_store %arg7[%c0_20, %c0_21, %c0_22], %66 {strides = array<i32>} : memref<1x128x128xf32, #tpu.memory_space<vmem>>, vector<1x128x128xf32>,
    %67 = arith.truncf %63 : vector<128x128xf32> to vector<128x128xbf16>
    %cst_23 = arith.constant dense<0.000000e+00> : vector<128x32xf32>
    %68 = tpu.matmul %67, %13, %cst_23 {dimension_numbers = #tpu.dot_dimension_numbers<[1], [0], [0], [1], [0, 0, 1, 1], [], []>} : vector<128x128xbf16>, vector<128x32xbf16>, vector<128x32xf32> -> vector<128x32xf32>
    %69 = arith.truncf %68 : vector<128x32xf32> to vector<128x32xbf16>
    %c0_24 = arith.constant 0 : index
    %c0_25 = arith.constant 0 : index
    %70 = vector.load %arg4[%c0_24, %c0_25] : memref<32x32xbf16, #tpu.memory_space<vmem>>, vector<32x32xbf16>
    %cst_26 = arith.constant dense<0.000000e+00> : vector<128x32xf32>
    %71 = tpu.matmul %69, %70, %cst_26 {dimension_numbers = #tpu.dot_dimension_numbers<[1], [0], [0], [1], [0, 0, 1, 1], [], []>} : vector<128x32xbf16>, vector<32x32xbf16>, vector<128x32xf32> -> vector<128x32xf32>
    %c0_27 = arith.constant 0 : index
    %c0_28 = arith.constant 0 : index
    %72 = vector.load %arg5[%c0_27, %c0_28] : memref<1x32xf32, #tpu.memory_space<vmem>>, vector<1x32xf32>
    %73 = vector.broadcast %72 : vector<1x32xf32> to vector<128x32xf32>
    %74 = arith.addf %71, %73 : vector<128x32xf32>
    %c0_29 = arith.constant 0 : index
    %c0_30 = arith.constant 0 : index
    %c0_31 = arith.constant 0 : index
    %75 = vector.load %arg6[%c0_29, %c0_30, %c0_31] : memref<1x128x32xf32, #tpu.memory_space<vmem>>, vector<1x128x32xf32>
    %76 = vector.shape_cast %75 : vector<1x128x32xf32> to vector<128x32xf32>
    %77 = vector.shape_cast %74 : vector<128x32xf32> to vector<1x128x32xf32>
    tpu.vector_store %arg6[%c0_29, %c0_30, %c0_31], %77 {strides = array<i32>} : memref<1x128x32xf32, #tpu.memory_space<vmem>>, vector<1x128x32xf32>,
    return
  }
  func.func @transform_0(%arg0: i32) -> (i32, i32, i32) {
    %c0_i32 = arith.constant 0 : i32
    %c0_i32_0 = arith.constant 0 : i32
    %c0_i32_1 = arith.constant 0 : i32
    return %arg0, %c0_i32, %c0_i32_0 : i32, i32, i32
  }
  func.func @transform_1(%arg0: i32) -> (i32, i32) {
    %c0_i32 = arith.constant 0 : i32
    %c0_i32_0 = arith.constant 0 : i32
    %c0_i32_1 = arith.constant 0 : i32
    return %c0_i32, %c0_i32_0 : i32, i32
  }
  func.func @transform_2(%arg0: i32) -> (i32, i32) {
    %c0_i32 = arith.constant 0 : i32
    %c0_i32_0 = arith.constant 0 : i32
    %c0_i32_1 = arith.constant 0 : i32
    return %c0_i32, %c0_i32_0 : i32, i32
  }
  func.func @transform_3(%arg0: i32) -> (i32, i32) {
    %c0_i32 = arith.constant 0 : i32
    %c0_i32_0 = arith.constant 0 : i32
    %c0_i32_1 = arith.constant 0 : i32
    return %c0_i32, %c0_i32_0 : i32, i32
  }
  func.func @transform_4(%arg0: i32) -> (i32, i32) {
    %c0_i32 = arith.constant 0 : i32
    %c0_i32_0 = arith.constant 0 : i32
    %c0_i32_1 = arith.constant 0 : i32
    return %c0_i32, %c0_i32_0 : i32, i32
  }
  func.func @transform_5(%arg0: i32) -> (i32, i32, i32) {
    %c0_i32 = arith.constant 0 : i32
    %c0_i32_0 = arith.constant 0 : i32
    %c0_i32_1 = arith.constant 0 : i32
    return %arg0, %c0_i32, %c0_i32_0 : i32, i32, i32
  }
  func.func @transform_6(%arg0: i32) -> (i32, i32, i32) {
    %c0_i32 = arith.constant 0 : i32
    %c0_i32_0 = arith.constant 0 : i32
    %c0_i32_1 = arith.constant 0 : i32
    return %arg0, %c0_i32, %c0_i32_0 : i32, i32, i32
  }
}

</mosaic_0001>

<bundles_post_ra>
// kernel: tpu_custom_call.1
= control target key start
LH: loop header
LB: loop body
LE: loop exit
PB: predicated region body
PF: predicated region fallthrough
CT: control target
= control target key end

     0   :  { %12 = vsyncpa [#allocation3], 0  ;;  %s2358_s0 = inlined_call_operand.vmem [shape: f32[2,128,32], index: 0, kind: input, shape index: {}]   ;;  %s2359_s1 = inlined_call_operand.vmem [shape: bf16[32,96], index: 1, kind: input, shape index: {}]   ;;  %s2360_s2 = inlined_call_operand.vmem [shape: f32[1,96], index: 2, kind: input, shape index: {}]   ;;  %s2361_s3 = inlined_call_operand.vmem [shape: bf16[32,32], index: 3, kind: input, shape index: {}]   ;;  %s2362_s4 = inlined_call_operand.vmem [shape: f32[1,32], index: 4, kind: input, shape index: {}]   ;;  %s2363_s5 = inlined_call_operand.vmem [shape: f32[2,128,32], index: 5, kind: output, shape index: {0}]   ;;  %s2364_s6 = inlined_call_operand.hbm [shape: f32[2,128,128], index: 6, kind: output, shape index: {1}]  }
   0x1   :  { %14 = vsyncpa [#allocation3 + $0x1], 0  ;;  %s1873_s21 = smov 0   ;;  %s1875_s22 = smov 0  }
   0x2   :  { %s1877_s23 = smov 0   ;;  %s1879_s24 = smov 0  }
   0x3 LB: > { %s1894_s25 = sadd.s32 4294967295, %s1831_s24   ;;  %s1447_s26 = sadd.s32 4294967294, %s1831_s24   ;;  %s1831_s24 = sphi %s1879_s24, %s2374_s24   ;;  %s1827_s23 = sphi %s1877_s23, %s2373_s23   ;;  %s1823_s22 = sphi %s1875_s22, %s2372_s22   ;;  %s1819_s21 = sphi %s1873_s21, %s2371_s21  }
   0x4   : > { %s1898_s27 = sadd.s32 1, %s1831_s24   ;;  %s163_s28 = sadd.s32 1, %s1827_s23 }
   0x5   : > { %s160_s29 = ssub.s32 %s1831_s24, %s1898_s27  ;;  %p173_p0 = scmp.ne.s32.totalorder %s1827_s23, %s1823_s22 }
   0x6   : > { %p161_p1 = scmp.eq.s32.totalorder %s160_s29, 0  ;;  %p174_p2 = scmp.eq.s32.totalorder %s1894_s25, 1 }
   0x7   : > { %p179_p3 = scmp.ne.s32.totalorder %s1823_s22, %s1819_s21  ;;  %p180_p4 = scmp.eq.s32.totalorder %s1447_s26, 1 }
   0x8   : > { %s1909_s30 = scalar_select %p161_p1, %s1827_s23, %s163_s28  }
   0x9   : > { %p1911_p5 = por %p174_p2, %p173_p0  ;;  %p1915_p6 = por %p180_p4, %p179_p3 }
   0xa   : > { %p1450_p7 = scmp.ge.s32.totalorder %s1831_s24, 1  ;;  %p218_p8 = scmp.lt.s32.totalorder %s1831_s24, 3 }
   0xc   : > { %p219_p9 = pnand %p1450_p7, %p218_p8 }
   0xd   : > { %v1701_v0 = vld [vmem:[%s2359_s1] sm:$0xff] (!%p219_p9)   ;;  %p253_p10 = scmp.lt.s32.totalorder (!%p219_p9), %s1894_s25, 1  ;;  %v1702_v1 = vld [vmem:[%s2359_s1 + $0x8] sm:$0xff] (!%p219_p9)   ;;  %vm311_vm0 = vcmask (!%p219_p9), 261120   ;;  %s1833_s20 = smov (!%p219_p9), 96  }
   0xe   : > { %222 = sbr.rel (%p219_p9) target bundleno = 1494 (0x5d6), region = 40  ;;  %1546 = vmatprep.subr.bf16.mxu0 (!%p219_p9), %v1701_v0  ;;  %v1456_v27 = vld [vmem:[%s2360_s2] ss:$0 sm:$0xff] (!%p219_p9)  ;;  %s1834_s26 = smov (!%p219_p9), 64  }
   0xf   : > { %1547 = vmatpush3.bf16.msra.mxu0 (!%p219_p9), %v1701_v0  ;;  %s250_s28 = sand.u32 (!%p219_p9), 1, %s1823_s22   ;;  %s1493_s16 = sshll.u32 (!%p219_p9), %s1894_s25, 11 }
  0x10   : > { %1548 = vmatprep.subr.bf16.mxu0 (!%p219_p9), %v1702_v1  ;;  %s1451_s29 = sshll.u32 (!%p219_p9), %s250_s28, 7 }
  0x11   : > { %s2207_s9 = scalar_lea.vmem (!%p219_p9), [#allocation2], %s1451_s29 }
  0x13   : > { %1549 = vmatpush3.bf16.msra.mxu0 (!%p219_p9), %v1702_v1 }
  0x15   : > { %s1929_s13 = scalar_select %p253_p10, %s1894_s25, 1 }
  0x16   : > { %s1835_s25 = smov [#allocation2]  }
  0x17   : > { %s1491_s14 = sshll.u32 %s1929_s13, 7 }
  0x18   : > { %s1937_s17 = scalar_lea.vmem %s2358_s0, %s1491_s14 }
  0x19   : > { %v264_v2 = vld [vmem:[%s1937_s17] sm:$0xff]  ;;  %v265_v3 = vld [vmem:[%s1937_s17 + $0x8] sm:$0xff]  ;;  %v266_v4 = vld [vmem:[%s1937_s17 + $0x10] sm:$0xff] }
  0x1a   : > { %v280_v5 = vpack.c.bf16 %v265_v3, %v264_v2  ;;  %v267_v6 = vld [vmem:[%s1937_s17 + $0x18] sm:$0xff]  ;;  %v268_v7 = vld [vmem:[%s1937_s17 + $0x20] sm:$0xff]  ;;  %v269_v8 = vld [vmem:[%s1937_s17 + $0x28] sm:$0xff] }
  0x1b   : > { %v281_v9 = vpack.c.bf16 %v267_v6, %v266_v4  ;;  %v282_v10 = vpack.c.bf16 %v269_v8, %v268_v7  ;;  %v270_v11 = vld [vmem:[%s1937_s17 + $0x30] sm:$0xff]  ;;  %v271_v12 = vld [vmem:[%s1937_s17 + $0x38] sm:$0xff]  ;;  %v272_v13 = vld [vmem:[%s1937_s17 + $0x40] sm:$0xff] }
  0x1c   : > { %1550 = vmatprep.mubr.msk.bf16.mxu0 %vm311_vm0, %v280_v5  ;;  %v273_v14 = vld [vmem:[%s1937_s17 + $0x48] sm:$0xff]  ;;  %v283_v15 = vpack.c.bf16 %v271_v12, %v270_v11  ;;  %v274_v17 = vld [vmem:[%s1937_s17 + $0x50] sm:$0xff]  ;;  %v275_v18 = vld [vmem:[%s1937_s17 + $0x58] sm:$0xff] }
  0x1d   : > { %1551 = vmatmul.mubr.msk.bf16.vlgmr.msra.gmra.mrb[0].mxu0 %vm311_vm0, %v281_v9  ;;  %v284_v16 = vpack.c.bf16 %v273_v14, %v272_v13  ;;  %v276_v19 = vld [vmem:[%s1937_s17 + $0x60] sm:$0xff]  ;;  %v277_v20 = vld [vmem:[%s1937_s17 + $0x68] sm:$0xff]  ;;  %v285_v21 = vpack.c.bf16 %v275_v18, %v274_v17  ;;  %v278_v23 = vld [vmem:[%s1937_s17 + $0x70] sm:$0xff] }
  0x1e   : > { %1554 = vmatprep.mubr.msk.bf16.mxu0 %vm311_vm0, %v282_v10  ;;  %v286_v22 = vpack.c.bf16 %v277_v20, %v276_v19  ;;  %v279_v24 = vld [vmem:[%s1937_s17 + $0x78] sm:$0xff]  ;;  %v626_v20 = vlaneseq  ;;  %s1360_s17 = sshll.u32 %s2207_s9, 4  ;;  %s2271_s17 = int_to_ptr.vmem [resolvable:$true] %s1360_s17 }
  0x1f   : > { %v287_v25 = vpack.c.bf16 %v279_v24, %v278_v23  ;;  %s1769_s29 = scalar_lea.vmem %s2271_s17, 2048 }
  0x20   : > { %p1770_p11 = scmp.ne.s32.totalorder %s2271_s17, %s1769_s29 }
  0x22   : > { %p1771_p12 = pnand %p1770_p11, %p1911_p5 }
  0x24   : > { %p1772_p13 = pneg %p1771_p12 }
  0x25   : > { %1555 = vmatmul.mubr.msk.bf16.gmra.mrb[4].mxu0 %vm311_vm0, %v283_v15 }
  0x26   : > { %1558 = vmatprep.mubr.msk.bf16.mxu0 %vm311_vm0, %v284_v16 }
  0x2d   : > { %1559 = vmatmul.mubr.msk.bf16.gmra.mrb[8].mxu0 %vm311_vm0, %v285_v21  ;;  %v2027_v21 = vshrl.u32 %v626_v20, 7 }
  0x2e   : > { %1562 = vmatprep.mubr.msk.bf16.mxu0 %vm311_vm0, %v286_v22  ;;  %v644_v22 = vand.u32 127, %v626_v20 }
  0x2f   : > { %v642_v23 = vadd.s32 120, %v2027_v21  ;;  %v640_v24 = vadd.s32 104, %v2027_v21 }
  0x35   : > { %1563 = vmatmul.mubr.msk.bf16.gmra.mrb[12].mxu0 %vm311_vm0, %v287_v25  ;;  %v2031_v25 = vand.u32 15, %v644_v22 }
  0xf0   : > { %v1552_v26 = vpop.f32.mrb[0].mxu0 }
  0xf1   : > { %v370_v28 = vpop.f32.mrb[1].mxu0  ;;  %v379_v30 = vadd.f32 %v1552_v26, %v1456_v27  ;;  %v754_v26 = vand.u32 15, %v642_v23 }
  0xf2   : > { %v1553_v29 = vpop.f32.mrb[2].mxu0  ;;  %v371_v33 = vadd.f32 %v1456_v27, %v370_v28 }
  0xf3   : > { %v382_v31 = vadd.f32 %v1553_v29, %v1456_v27  ;;  %v373_v32 = vpop.f32.mrb[3].mxu0  ;;  %vm2034_vm1 = vcmp.eq.s32.totalorder %v754_v26, %v2031_v25 }
  0xf4   : > { %v374_v34 = vadd.f32 %v1456_v27, %v373_v32 }
  0xf5   : > { %v1966_v35 = vpack.c.bf16 %v382_v31, %v379_v30  ;;  %v629_v30 = vadd.s32 16, %v2027_v21  ;;  %v628_v31 = vadd.s32 8, %v2027_v21 }
  0xf6   : > { %v433_v36 = vpack.c.bf16 %v374_v34, %v371_v33  ;;  %v630_v33 = vadd.s32 24, %v2027_v21 }
  0xf7   : > { %v663_v32 = vand.u32 15, %v629_v30  ;;  %v656_v34 = vand.u32 15, %v628_v31 }
  0xf8   : > { %449 = vrot.lane.b32.xlu0 %v433_v36, %s1833_s20  ;;  %1582 = vmatprep.mubr.msk.bf16.mxu1 %vm311_vm0, %v433_v36  ;;  %v1556_v37 = vpop.f32.mrb[4].mxu0 }
  0xf9   : > { %v395_v38 = vadd.f32 %v1556_v37, %v1456_v27  ;;  %v386_v39 = vpop.f32.mrb[5].mxu0  ;;  %vm851_vm3 = vcmp.eq.s32.totalorder %v663_v32, %v2031_v25  ;;  %v649_v37 = vand.u32 15, %v2027_v21  ;;  %vm850_vm4 = vcmp.eq.s32.totalorder %v656_v34, %v2031_v25 }
  0xfa   : > { %v387_v40 = vadd.f32 %v1456_v27, %v386_v39  ;;  %v1557_v41 = vpop.f32.mrb[6].mxu0  ;;  %v639_v34 = vadd.s32 96, %v2027_v21 }
  0xfb   : > { %v398_v42 = vadd.f32 %v1557_v41, %v1456_v27  ;;  %v389_v43 = vpop.f32.mrb[7].mxu0  ;;  %vm849_vm5 = vcmp.eq.s32.totalorder %v649_v37, %v2031_v25 }
  0xfc   : > { %v390_v44 = vadd.f32 %v1456_v27, %v389_v43  ;;  %451 = vrot.lane.b32.xlu0 %v1966_v35, %s1833_s20 }
  0xfd   : > { %v1972_v45 = vpack.c.bf16 %v398_v42, %v395_v38  ;;  %v633_v38 = vadd.s32 48, %v2027_v21  ;;  %v670_v42 = vand.u32 15, %v630_v33 }
  0xfe   : > { %v1974_v46 = vpack.c.bf16 %v390_v44, %v387_v40 }
  0xff   : > { %vm852_vm6 = vcmp.eq.s32.totalorder %v670_v42, %v2031_v25 }
 0x100   : > { %453 = vrot.lane.b32.xlu1 %v1974_v46, %s1833_s20  ;;  %v1560_v47 = vpop.f32.mrb[8].mxu0 }
 0x101   : > { %v411_v48 = vadd.f32 %v1560_v47, %v1456_v27  ;;  %v402_v49 = vpop.f32.mrb[9].mxu0 }
 0x102   : > { %v403_v50 = vadd.f32 %v1456_v27, %v402_v49  ;;  %v1561_v51 = vpop.f32.mrb[10].mxu0 }
 0x103   : > { %v414_v52 = vadd.f32 %v1561_v51, %v1456_v27  ;;  %v405_v53 = vpop.f32.mrb[11].mxu0  ;;  %v634_v51 = vadd.s32 56, %v2027_v21 }
 0x104   : > { %455 = vrot.lane.b32.xlu1 %v1972_v45, %s1833_s20  ;;  %v406_v54 = vadd.f32 %v1456_v27, %v405_v53 }
 0x105   : > { %v1980_v55 = vpack.c.bf16 %v414_v52, %v411_v48  ;;  %v631_v48 = vadd.s32 32, %v2027_v21 }
 0x106   : > { %v1982_v56 = vpack.c.bf16 %v406_v54, %v403_v50  ;;  %v691_v50 = vand.u32 15, %v633_v38 }
 0x108   : > { %v1564_v57 = vpop.f32.mrb[12].mxu0  ;;  %459 = vrot.lane.b32.xlu1 %v1980_v55, %s1833_s20  ;;  %457 = vrot.lane.b32.xlu0 %v1982_v56, %s1833_s20  ;;  %vm855_vm7 = vcmp.eq.s32.totalorder %v691_v50, %v2031_v25 }
 0x109   : > { %v427_v58 = vadd.f32 %v1564_v57, %v1456_v27  ;;  %v418_v59 = vpop.f32.mrb[13].mxu0  ;;  %v677_v57 = vand.u32 15, %v631_v48 }
 0x10a   : > { %v419_v60 = vadd.f32 %v1456_v27, %v418_v59  ;;  %v1565_v61 = vpop.f32.mrb[14].mxu0 }
 0x10b   : > { %v430_v62 = vadd.f32 %v1565_v61, %v1456_v27  ;;  %v421_v63 = vpop.f32.mrb[15].mxu0  ;;  %v637_v61 = vadd.s32 80, %v2027_v21  ;;  %vm853_vm8 = vcmp.eq.s32.totalorder %v677_v57, %v2031_v25 }
 0x10c   : > { %v422_v0 = vadd.f32 %v1456_v27, %v421_v63  ;;  %v740_v27 = vand.u32 15, %v640_v24 }
 0x10d   : > { %v1988_v1 = vpack.c.bf16 %v430_v62, %v427_v58  ;;  %v632_v58 = vadd.s32 40, %v2027_v21 }
 0x10e   : > { %v1990_v2 = vpack.c.bf16 %v422_v0, %v419_v60  ;;  %vm2039_vm2 = vcmp.eq.s32.totalorder %v740_v27, %v2031_v25  ;;  %v698_v60 = vand.u32 15, %v634_v51 }
 0x10f   : > { %463 = vrot.lane.b32.xlu1 %v1988_v1, %s1833_s20 }
 0x110   : > { %461 = vrot.lane.b32.xlu0 %v1990_v2, %s1833_s20  ;;  %vm856_vm9 = vcmp.eq.s32.totalorder %v698_v60, %v2031_v25  ;;  %s2269_s20 = scalar_lea.hbm %s2364_s6, %s1493_s16 }
 0x113   : > { %1049 = vrot.lane.b32.xlu1 %v433_v36, %s1834_s26 }
 0x16a   : > { %v450_v3 = vpop.permute.xlu0 %449 }
 0x16b   : > { %1650 = vmatprep.subr.msk.bf16.mxu1 %vm311_vm0, %v450_v3  ;;  %v490_v4 = vsel %vm311_vm0, %v450_v3, 0 }
 0x16c   : > { %1567 = vmatpush3.bf16.xpose.msra.mxu1 %v490_v4 }
 0x16e   : > { %v452_v5 = vpop.permute.xlu0 %451 }
 0x16f   : > { %1651 = vmatprep.subr.msk.bf16.mxu1 %vm311_vm0, %v452_v5  ;;  %v493_v7 = vsel %vm311_vm0, %v452_v5, 0 }
 0x172   : > { %v454_v6 = vpop.permute.xlu1 %453 }
 0x173   : > { %v496_v9 = vsel %vm311_vm0, %v454_v6, 0 }
 0x174   : > { %1569 = vmatpush3.bf16.xpose.msra.mxu1 %v493_v7 }
 0x175   : > { %1652 = vmatprep.subr.msk.bf16.mxu1 %vm311_vm0, %v454_v6 }
 0x176   : > { %v456_v8 = vpop.permute.xlu1 %455 }
 0x177   : > { %v499_v13 = vsel %vm311_vm0, %v456_v8, 0 }
 0x17a   : > { %v460_v10 = vpop.permute.xlu1 %459  ;;  %v458_v12 = vpop.permute.xlu0 %457 }
 0x17b   : > { %v502_v15 = vsel %vm311_vm0, %v458_v12, 0  ;;  %v505_v17 = vsel %vm311_vm0, %v460_v10, 0 }
 0x17c   : > { %1571 = vmatpush3.bf16.xpose.msra.mxu1 %v496_v9  ;;  %v719_v9 = vand.u32 15, %v637_v61 }
 0x17d   : > { %1653 = vmatprep.subr.msk.bf16.mxu1 %vm311_vm0, %v456_v8  ;;  %v684_v8 = vand.u32 15, %v632_v58 }
 0x17e   : > { %vm859_vm11 = vcmp.eq.s32.totalorder %v719_v9, %v2031_v25 }
 0x17f   : > { %vm854_vm10 = vcmp.eq.s32.totalorder %v684_v8, %v2031_v25 }
 0x181   : > { %v464_v11 = vpop.permute.xlu1 %463 }
 0x182   : > { %v462_v16 = vpop.permute.xlu0 %461  ;;  %v511_v19 = vsel %vm311_vm0, %v464_v11, 0 }
 0x183   : > { %v508_v18 = vsel %vm311_vm0, %v462_v16, 0 }
 0x184   : > { %1573 = vmatpush3.bf16.xpose.msra.mxu1 %v499_v13 }
 0x185   : > { %v1050_v14 = vpop.permute.xlu1 %1049  ;;  %1654 = vmatprep.subr.msk.bf16.mxu1 %vm311_vm0, %v458_v12 }
 0x186   : > { %1598 = vmatprep.subr.bf16.mxu0 %v1050_v14 }
 0x187   : > { %1599 = vmatpush3.bf16.msra.mxu0 %v1050_v14 }
 0x18c   : > { %1575 = vmatpush3.bf16.xpose.msra.mxu1 %v502_v15  ;;  %v636_v15 = vadd.s32 72, %v2027_v21 }
 0x18d   : > { %1655 = vmatprep.subr.msk.bf16.mxu1 %vm311_vm0, %v460_v10  ;;  %v635_v10 = vadd.s32 64, %v2027_v21 }
 0x18e   : > { %v712_v32 = vand.u32 15, %v636_v15 }
 0x190   : > { %vm858_vm14 = vcmp.eq.s32.totalorder %v712_v32, %v2031_v25 }
 0x194   : > { %1577 = vmatpush3.bf16.xpose.msra.mxu1 %v505_v17  ;;  %v705_v17 = vand.u32 15, %v635_v10 }
 0x195   : > { %1656 = vmatprep.subr.msk.bf16.mxu1 %vm311_vm0, %v462_v16 }
 0x196   : > { %vm857_vm12 = vcmp.eq.s32.totalorder %v705_v17, %v2031_v25 }
 0x19c   : > { %1579 = vmatpush3.bf16.xpose.msra.mxu1 %v508_v18 }
 0x19d   : > { %1657 = vmatprep.subr.msk.bf16.mxu1 %vm311_vm0, %v464_v11  ;;  %v638_v11 = vadd.s32 88, %v2027_v21 }
 0x19f   : > { %v726_v18 = vand.u32 15, %v638_v11 }
 0x1a1   : > { %vm860_vm13 = vcmp.eq.s32.totalorder %v726_v18, %v2031_v25 }
 0x1a4   : > { %1581 = vmatpush3.bf16.xpose.msra.mxu1 %v511_v19  ;;  %v641_v19 = vadd.s32 112, %v2027_v21 }
 0x1a6   : > { %v747_v33 = vand.u32 15, %v641_v19 }
 0x1a8   : > { %vm863_vm15 = vcmp.eq.s32.totalorder %v747_v33, %v2031_v25 }
 0x1ab   : > { %1583 = vmatmul.mubr.msk.bf16.vlgmr.msra.gmra.mrb[0].mxu1 %vm311_vm0, %v1966_v35 }
 0x1ac   : > { %1586 = vmatprep.mubr.msk.bf16.mxu1 %vm311_vm0, %v1974_v46 }
 0x1b3   : > { %1587 = vmatmul.mubr.msk.bf16.gmra.mrb[4].mxu1 %vm311_vm0, %v1972_v45 }
 0x1b4   : > { %1590 = vmatprep.mubr.msk.bf16.mxu1 %vm311_vm0, %v1982_v56 }
 0x1bb   : > { %1591 = vmatmul.mubr.msk.bf16.gmra.mrb[8].mxu1 %vm311_vm0, %v1980_v55 }
 0x1bc   : > { %1594 = vmatprep.mubr.msk.bf16.mxu1 %vm311_vm0, %v1990_v2 }
 0x1c3   : > { %1595 = vmatmul.mubr.msk.bf16.gmra.mrb[12].mxu1 %vm311_vm0, %v1988_v1 }
 0x27e   : > { %v1584_v36 = vpop.f32.mrb[0].mxu1 }
 0x27f   : > { %v612_v39 = vmul.f32 0.17677669, %v1584_v36  ;;  %v547_v40 = vpop.f32.mrb[1].mxu1 }
 0x280   : > { %v1585_v41 = vpop.f32.mrb[2].mxu1  ;;  %v610_v43 = vmul.f32 0.17677669, %v547_v40  ;;  %v733_v40 = vand.u32 15, %v639_v34 }
 0x281   : > { %v550_v44 = vpop.f32.mrb[3].mxu1  ;;  %v2049_v47 = vsel %vm851_vm3, %v612_v39, -1e+30  ;;  %v613_v52 = vmul.f32 0.17677669, %v1585_v41 }
 0x282   : > { %v611_v49 = vmul.f32 0.17677669, %v550_v44  ;;  %885 = vmax.xlane.f32.xlu0 %v2049_v47  ;;  %v2059_v54 = vsel %vm849_vm5, %v610_v43, -1e+30  ;;  %vm861_vm3 = vcmp.eq.s32.totalorder %v733_v40, %v2031_v25 }
 0x283   : > { %v2066_v4 = vsel %vm852_vm6, %v613_v52, -1e+30 }
 0x284   : > { %v2056_v53 = vsel %vm850_vm4, %v611_v49, -1e+30 }
 0x285   : > { %883 = vmax.xlane.f32.xlu1 %v2056_v53 }
 0x286   : > { %881 = vmax.xlane.f32.xlu0 %v2059_v54  ;;  %v1588_v59 = vpop.f32.mrb[4].mxu1 }
 0x287   : > { %v616_v62 = vmul.f32 0.17677669, %v1588_v59  ;;  %v563_v63 = vpop.f32.mrb[5].mxu1 }
 0x288   : > { %v614_v0 = vmul.f32 0.17677669, %v563_v63  ;;  %v1589_v3 = vpop.f32.mrb[6].mxu1 }
 0x289   : > { %v617_v5 = vmul.f32 0.17677669, %v1589_v3  ;;  %v566_v6 = vpop.f32.mrb[7].mxu1  ;;  %v2068_v7 = vsel %vm855_vm7, %v616_v62, -1e+30 }
 0x28a   : > { %887 = vmax.xlane.f32.xlu0 %v2066_v4  ;;  %893 = vmax.xlane.f32.xlu1 %v2068_v7  ;;  %v615_v12 = vmul.f32 0.17677669, %v566_v6  ;;  %v2076_v13 = vsel %vm853_vm8, %v614_v0, -1e+30 }
 0x28b   : > { %v2078_v14 = vsel %vm856_vm9, %v617_v5, -1e+30 }
 0x28c   : > { %v2086_v26 = vsel %vm854_vm10, %v615_v12, -1e+30 }
 0x28e   : > { %889 = vmax.xlane.f32.xlu1 %v2076_v13  ;;  %895 = vmax.xlane.f32.xlu0 %v2078_v14  ;;  %v1592_v16 = vpop.f32.mrb[8].mxu1 }
 0x28f   : > { %v620_v20 = vmul.f32 0.17677669, %v1592_v16  ;;  %v579_v22 = vpop.f32.mrb[9].mxu1 }
 0x290   : > { %v618_v23 = vmul.f32 0.17677669, %v579_v22  ;;  %v1593_v24 = vpop.f32.mrb[10].mxu1 }
 0x291   : > { %v621_v27 = vmul.f32 0.17677669, %v1593_v24  ;;  %v582_v30 = vpop.f32.mrb[11].mxu1  ;;  %v2088_v31 = vsel %vm859_vm11, %v620_v20, -1e+30 }
 0x292   : > { %891 = vmax.xlane.f32.xlu0 %v2086_v26  ;;  %901 = vmax.xlane.f32.xlu1 %v2088_v31  ;;  %v619_v36 = vmul.f32 0.17677669, %v582_v30  ;;  %v2095_v37 = vsel %vm857_vm12, %v618_v23, -1e+30 }
 0x293   : > { %v2097_v38 = vsel %vm860_vm13, %v621_v27, -1e+30 }
 0x294   : > { %v2103_v21 = vsel %vm858_vm14, %v619_v36, -1e+30 }
 0x296   : > { %897 = vmax.xlane.f32.xlu1 %v2095_v37  ;;  %903 = vmax.xlane.f32.xlu0 %v2097_v38  ;;  %v1596_v39 = vpop.f32.mrb[12].mxu1 }
 0x297   : > { %v624_v41 = vmul.f32 0.17677669, %v1596_v39  ;;  %v595_v42 = vpop.f32.mrb[13].mxu1 }
 0x298   : > { %v622_v43 = vmul.f32 0.17677669, %v595_v42  ;;  %v1597_v44 = vpop.f32.mrb[14].mxu1 }
 0x299   : > { %v625_v48 = vmul.f32 0.17677669, %v1597_v44  ;;  %v598_v49 = vpop.f32.mrb[15].mxu1  ;;  %v2105_v50 = vsel %vm863_vm15, %v624_v41, -1e+30 }
 0x29a   : > { %v623_v51 = vmul.f32 0.17677669, %v598_v49  ;;  %899 = vmax.xlane.f32.xlu0 %v2103_v21  ;;  %909 = vmax.xlane.f32.xlu1 %v2105_v50  ;;  %v2118_v58 = vsel %vm861_vm3, %v622_v43, -1e+30 }
 0x29b   : > { %v2112_v52 = vsel %vm2034_vm1, %v625_v48, -1e+30 }
 0x29c   : > { %v2116_v57 = vsel %vm2039_vm2, %v623_v51, -1e+30 }
 0x29e   : > { %905 = vmax.xlane.f32.xlu1 %v2118_v58 }
 0x2af   : > { %1051 = vrot.lane.b32.xlu1 %v1966_v35, %s1834_s26 }
 0x2b0   : > { %1053 = vrot.lane.b32.xlu0 %v1974_v46, %s1834_s26 }
 0x2b3   : > { %1055 = vrot.lane.b32.xlu1 %v1972_v45, %s1834_s26 }
 0x2b4   : > { %1057 = vrot.lane.b32.xlu0 %v1982_v56, %s1834_s26 }
 0x2b7   : > { %1061 = vrot.lane.b32.xlu1 %v1990_v2, %s1834_s26 }
 0x2d3   : > { %911 = vmax.xlane.f32.xlu0 %v2112_v52 }
 0x2d7   : > { %907 = vmax.xlane.f32.xlu0 %v2116_v57 }
 0x2ed   : > { %1059 = vrot.lane.b32.xlu0 %v1980_v55, %s1834_s26 }
 0x30f   : > { %v886_v35 = vpop.xlane.xlu0 %885 }
 0x310   : > { %v915_v25 = vsub.f32 %v2049_v47, %v886_v35 }
 0x312   : > { %v933_v46 = vmul.f32 1.442695, %v915_v25  ;;  %v884_v28 = vpop.xlane.xlu1 %883 }
 0x313   : > { %v882_v29 = vpop.xlane.xlu0 %881  ;;  %v914_v59 = vsub.f32 %v2056_v53, %v884_v28 }
 0x314   : > { %1705 = vpow2.f32 %v933_v46  ;;  %v913_v45 = vsub.f32 %v2059_v54, %v882_v29 }
 0x315   : > { %v931_v0 = vmul.f32 1.442695, %v914_v59 }
 0x316   : > { %v929_v56 = vmul.f32 1.442695, %v913_v45 }
 0x317   : > { %v888_v2 = vpop.xlane.xlu0 %887  ;;  %v894_v60 = vpop.xlane.xlu1 %893 }
 0x318   : > { %1707 = vpow2.f32 %v929_v56  ;;  %v916_v61 = vsub.f32 %v2066_v4, %v888_v2  ;;  %v919_v62 = vsub.f32 %v2068_v7, %v894_v60 }
 0x31a   : > { %v935_v55 = vmul.f32 1.442695, %v916_v61  ;;  %v941_v63 = vmul.f32 1.442695, %v919_v62 }
 0x31b   : > { %v890_v47 = vpop.xlane.xlu1 %889  ;;  %v896_v3 = vpop.xlane.xlu0 %895 }
 0x31c   : > { %1709 = vpow2.f32 %v935_v55  ;;  %v917_v5 = vsub.f32 %v2076_v13, %v890_v47  ;;  %v920_v54 = vsub.f32 %v2078_v14, %v896_v3 }
 0x31d   : > { %1711 = vpow2.f32 %v941_v63 }
 0x31e   : > { %v2142_v6 = vpop.eup %1705  ;;  %v937_v53 = vmul.f32 1.442695, %v917_v5  ;;  %1713 = vpow2.f32 %v931_v0  ;;  %v943_v7 = vmul.f32 1.442695, %v920_v54 }
 0x31f   : > { %v892_v8 = vpop.xlane.xlu0 %891  ;;  %v902_v9 = vpop.xlane.xlu1 %901  ;;  %965 = vadd.xlane.f32.xlu0 %v2142_v6 }
 0x320   : > { %1715 = vpow2.f32 %v937_v53  ;;  %v918_v4 = vsub.f32 %v2086_v26, %v892_v8  ;;  %v923_v10 = vsub.f32 %v2088_v31, %v902_v9 }
 0x322   : > { %v2147_v11 = vpop.eup %1707  ;;  %v939_v12 = vmul.f32 1.442695, %v918_v4  ;;  %v949_v14 = vmul.f32 1.442695, %v923_v10 }
 0x323   : > { %v898_v13 = vpop.xlane.xlu1 %897  ;;  %v904_v15 = vpop.xlane.xlu0 %903  ;;  %961 = vadd.xlane.f32.xlu0 %v2147_v11 }
 0x324   : > { %1717 = vpow2.f32 %v939_v12  ;;  %v921_v16 = vsub.f32 %v2095_v37, %v898_v13  ;;  %v924_v27 = vsub.f32 %v2097_v38, %v904_v15 }
 0x325   : > { %1719 = vpow2.f32 %v943_v7 }
 0x326   : > { %v2151_v17 = vpop.eup %1709  ;;  %1721 = vpow2.f32 %v949_v14  ;;  %v945_v26 = vmul.f32 1.442695, %v921_v16  ;;  %v951_v34 = vmul.f32 1.442695, %v924_v27 }
 0x327   : > { %v2153_v18 = vpop.eup %1711  ;;  %v900_v19 = vpop.xlane.xlu0 %899  ;;  %967 = vadd.xlane.f32.xlu0 %v2151_v17 }
 0x328   : > { %v910_v20 = vpop.xlane.xlu1 %909  ;;  %v922_v22 = vsub.f32 %v2103_v21, %v900_v19  ;;  %973 = vadd.xlane.f32.xlu1 %v2153_v18  ;;  %v2159_v24 = vpop.eup %1713 }
 0x329   : > { %v927_v23 = vsub.f32 %v2105_v50, %v910_v20 }
 0x32a   : > { %v2162_v30 = vpop.eup %1715  ;;  %v947_v31 = vmul.f32 1.442695, %v922_v22 }
 0x32b   : > { %963 = vadd.xlane.f32.xlu0 %v2159_v24  ;;  %v957_v33 = vmul.f32 1.442695, %v927_v23  ;;  %v1054_v38 = vpop.permute.xlu0 %1053 }
 0x32c   : > { %v906_v32 = vpop.xlane.xlu1 %905  ;;  %1723 = vpow2.f32 %v947_v31  ;;  %969 = vadd.xlane.f32.xlu1 %v2162_v30 }
 0x32d   : > { %1725 = vpow2.f32 %v945_v26  ;;  %v925_v36 = vsub.f32 %v2118_v58, %v906_v32 }
 0x32e   : > { %v2167_v37 = vpop.eup %1717  ;;  %1727 = vpow2.f32 %v957_v33 }
 0x32f   : > { %v2169_v39 = vpop.eup %1719  ;;  %971 = vadd.xlane.f32.xlu0 %v2167_v37  ;;  %1729 = vpow2.f32 %v951_v34  ;;  %v953_v41 = vmul.f32 1.442695, %v925_v36  ;;  %v1058_v48 = vpop.permute.xlu0 %1057 }
 0x330   : > { %v1052_v40 = vpop.permute.xlu1 %1051  ;;  %975 = vadd.xlane.f32.xlu1 %v2169_v39  ;;  %v2173_v42 = vpop.eup %1721 }
 0x331   : > { %1600 = vmatprep.subr.bf16.mxu0 %v1052_v40  ;;  %1731 = vpow2.f32 %v953_v41 }
 0x332   : > { %1601 = vmatpush3.bf16.msra.mxu0 %v1052_v40 }
 0x333   : > { %1602 = vmatprep.subr.bf16.mxu0 %v1054_v38 }
 0x334   : > { %981 = vadd.xlane.f32.xlu1 %v2173_v42  ;;  %v1056_v43 = vpop.permute.xlu1 %1055 }
 0x336   : > { %1603 = vmatpush3.bf16.msra.mxu0 %v1054_v38  ;;  %v2176_v44 = vpop.eup %1723 }
 0x337   : > { %1604 = vmatprep.subr.bf16.mxu0 %v1056_v43  ;;  %v2178_v21 = vpop.eup %1725  ;;  %979 = vadd.xlane.f32.xlu0 %v2176_v44 }
 0x338   : > { %977 = vadd.xlane.f32.xlu1 %v2178_v21  ;;  %v2182_v49 = vpop.eup %1727  ;;  %v1062_v56 = vpop.permute.xlu1 %1061 }
 0x339   : > { %v2184_v50 = vpop.eup %1729 }
 0x33a   : > { %1605 = vmatpush3.bf16.msra.mxu0 %v1056_v43 }
 0x33b   : > { %1606 = vmatprep.subr.bf16.mxu0 %v1058_v48  ;;  %989 = vadd.xlane.f32.xlu0 %v2182_v49  ;;  %v2188_v51 = vpop.eup %1731 }
 0x33c   : > { %983 = vadd.xlane.f32.xlu1 %v2184_v50 }
 0x33e   : > { %1607 = vmatpush3.bf16.msra.mxu0 %v1058_v48 }
 0x340   : > { %985 = vadd.xlane.f32.xlu1 %v2188_v51 }
 0x360   : > { %v912_v58 = vpop.xlane.xlu0 %911 }
 0x361   : > { %v928_v35 = vsub.f32 %v2112_v52, %v912_v58 }
 0x363   : > { %v959_v25 = vmul.f32 1.442695, %v928_v35 }
 0x364   : > { %v908_v46 = vpop.xlane.xlu0 %907 }
 0x365   : > { %1733 = vpow2.f32 %v959_v25  ;;  %v926_v28 = vsub.f32 %v2116_v57, %v908_v46 }
 0x367   : > { %v955_v29 = vmul.f32 1.442695, %v926_v28 }
 0x368   : > { %v1060_v45 = vpop.permute.xlu0 %1059 }
 0x369   : > { %1735 = vpow2.f32 %v955_v29  ;;  %1608 = vmatprep.subr.bf16.mxu0 %v1060_v45 }
 0x36a   : > { %1609 = vmatpush3.bf16.msra.mxu0 %v1060_v45 }
 0x36b   : > { %1610 = vmatprep.subr.bf16.mxu0 %v1062_v56 }
 0x36e   : > { %1611 = vmatpush3.bf16.msra.mxu0 %v1062_v56 }
 0x36f   : > { %v2193_v59 = vpop.eup %1733 }
 0x370   : > { %991 = vadd.xlane.f32.xlu1 %v2193_v59 }
 0x373   : > { %v2196_v52 = vpop.eup %1735 }
 0x374   : > { %987 = vadd.xlane.f32.xlu0 %v2196_v52 }
 0x38a   : > { %1063 = vrot.lane.b32.xlu0 %v1988_v1, %s1834_s26  ;;  %s2275_s26 = scalar_lea.sflag [#allocation3], %s250_s28 }
 0x3ac   : > { %v966_v57 = vpop.xlane.xlu0 %965 }
 0x3ad   : > { %1737 = vrcp.f32 %v966_v57 }
 0x3b0   : > { %v962_v2 = vpop.xlane.xlu0 %961 }
 0x3b1   : > { %1739 = vrcp.f32 %v962_v2 }
 0x3b4   : > { %v968_v60 = vpop.xlane.xlu0 %967 }
 0x3b5   : > { %v974_v61 = vpop.xlane.xlu1 %973  ;;  %1741 = vrcp.f32 %v968_v60 }
 0x3b6   : > { %1743 = vrcp.f32 %v974_v61 }
 0x3b7   : > { %v1738_v62 = vpop.eup %1737 }
 0x3b8   : > { %v2205_v55 = vmul.f32 %v1738_v62, %v2142_v6  ;;  %v964_v63 = vpop.xlane.xlu0 %963 }
 0x3b9   : > { %v970_v0 = vpop.xlane.xlu1 %969  ;;  %1745 = vrcp.f32 %v964_v63 }
 0x3ba   : > { %1027 = vst [vmem:[%s2207_s9 + $0x10] sm:$0xff] %v2205_v55  ;;  %1747 = vrcp.f32 %v970_v0 }
 0x3bb   : > { %v1740_v1 = vpop.eup %1739 }
 0x3bc   : > { %v972_v47 = vpop.xlane.xlu0 %971  ;;  %v994_v3 = vmul.f32 %v1740_v1, %v2147_v11 }
 0x3bd   : > { %v976_v5 = vpop.xlane.xlu1 %975  ;;  %1749 = vrcp.f32 %v972_v47 }
 0x3be   : > { %1751 = vrcp.f32 %v976_v5  ;;  %1025 = vst [vmem:[%s2207_s9] sm:$0xff] %v994_v3 }
 0x3bf   : > { %v1742_v54 = vpop.eup %1741 }
 0x3c0   : > { %v1744_v6 = vpop.eup %1743  ;;  %v2214_v53 = vmul.f32 %v1742_v54, %v2151_v17 }
 0x3c1   : > { %v982_v8 = vpop.xlane.xlu1 %981  ;;  %v2217_v9 = vmul.f32 %v1744_v6, %v2153_v18 }
 0x3c2   : > { %1028 = vst [vmem:[%s2207_s9 + $0x18] sm:$0xff] %v2214_v53  ;;  %1753 = vrcp.f32 %v982_v8  ;;  %v1042_v4 = vpack.c.bf16 %v2214_v53, %v2205_v55 }
 0x3c3   : > { %v1746_v7 = vpop.eup %1745  ;;  %1031 = vst [vmem:[%s2207_s9 + $0x30] sm:$0xff] %v2217_v9 }
 0x3c4   : > { %v1748_v10 = vpop.eup %1747  ;;  %v980_v11 = vpop.xlane.xlu0 %979  ;;  %v996_v12 = vmul.f32 %v1746_v7, %v2159_v24 }
 0x3c5   : > { %v978_v13 = vpop.xlane.xlu1 %977  ;;  %1755 = vrcp.f32 %v980_v11  ;;  %v1002_v15 = vmul.f32 %v1748_v10, %v2162_v30 }
 0x3c6   : > { %1757 = vrcp.f32 %v978_v13  ;;  %1026 = vst [vmem:[%s2207_s9 + $0x8] sm:$0xff] %v996_v12  ;;  %v1041_v14 = vpack.c.bf16 %v996_v12, %v994_v3 }
 0x3c7   : > { %v1750_v16 = vpop.eup %1749  ;;  %1029 = vst [vmem:[%s2207_s9 + $0x20] sm:$0xff] %v1002_v15 }
 0x3c8   : > { %v1752_v17 = vpop.eup %1751  ;;  %1614 = vmatprep.mubr.bf16.mxu0 %v1041_v14  ;;  %v990_v18 = vpop.xlane.xlu0 %989  ;;  %v1004_v19 = vmul.f32 %v1750_v16, %v2167_v37 }
 0x3c9   : > { %v984_v20 = vpop.xlane.xlu1 %983  ;;  %1759 = vrcp.f32 %v990_v18  ;;  %v1008_v22 = vmul.f32 %v1752_v17, %v2169_v39 }
 0x3ca   : > { %1761 = vrcp.f32 %v984_v20  ;;  %1030 = vst [vmem:[%s2207_s9 + $0x28] sm:$0xff] %v1004_v19  ;;  %v1043_v23 = vpack.c.bf16 %v1004_v19, %v1002_v15 }
 0x3cb   : > { %1032 = vst [vmem:[%s2207_s9 + $0x38] sm:$0xff] %v1008_v22  ;;  %v1044_v24 = vpack.c.bf16 %v1008_v22, %v2217_v9 }
 0x3cc   : > { %v1754_v26 = vpop.eup %1753 }
 0x3cd   : > { %v986_v27 = vpop.xlane.xlu1 %985  ;;  %v1014_v30 = vmul.f32 %v1754_v26, %v2173_v42 }
 0x3ce   : > { %1763 = vrcp.f32 %v986_v27 }
 0x3cf   : > { %v1756_v31 = vpop.eup %1755  ;;  %1035 = vst [vmem:[%s2207_s9 + $0x50] sm:$0xff] %v1014_v30 }
 0x3d0   : > { %v1758_v32 = vpop.eup %1757  ;;  %v1012_v33 = vmul.f32 %v1756_v31, %v2176_v44 }
 0x3d1   : > { %v1010_v34 = vmul.f32 %v1758_v32, %v2178_v21  ;;  %v1703_v21 = vld [vmem:[%s2361_s3] sm:$0xff]  }
 0x3d2   : > { %1034 = vst [vmem:[%s2207_s9 + $0x48] sm:$0xff] %v1012_v33 }
 0x3d3   : > { %v1760_v36 = vpop.eup %1759  ;;  %1033 = vst [vmem:[%s2207_s9 + $0x40] sm:$0xff] %v1010_v34  ;;  %v1045_v25 = vpack.c.bf16 %v1012_v33, %v1010_v34 }
 0x3d4   : > { %v1762_v37 = vpop.eup %1761  ;;  %v1022_v39 = vmul.f32 %v1760_v36, %v2182_v49 }
 0x3d5   : > { %v1016_v40 = vmul.f32 %v1762_v37, %v2184_v50  ;;  %v1704_v50 = vld [vmem:[%s2361_s3 + $0x8] sm:$0xff]  }
 0x3d6   : > { %1039 = vst [vmem:[%s2207_s9 + $0x70] sm:$0xff] %v1022_v39 }
 0x3d7   : > { %1036 = vst [vmem:[%s2207_s9 + $0x58] sm:$0xff] %v1016_v40  ;;  %v1046_v38 = vpack.c.bf16 %v1016_v40, %v1014_v30 }
 0x3d8   : > { %v1764_v41 = vpop.eup %1763 }
 0x3d9   : > { %v1018_v42 = vmul.f32 %v1764_v41, %v2188_v51 }
 0x3db   : > { %1037 = vst [vmem:[%s2207_s9 + $0x60] sm:$0xff] %v1018_v42 }
 0x3fd   : > { %v992_v43 = vpop.xlane.xlu1 %991 }
 0x3fe   : > { %1765 = vrcp.f32 %v992_v43 }
 0x401   : > { %v988_v44 = vpop.xlane.xlu0 %987 }
 0x402   : > { %1767 = vrcp.f32 %v988_v44 }
 0x405   : > { %v1064_v48 = vpop.permute.xlu0 %1063 }
 0x406   : > { %1612 = vmatprep.subr.bf16.mxu0 %v1064_v48 }
 0x407   : > { %1613 = vmatpush3.bf16.msra.mxu0 %v1064_v48 }
 0x408   : > { %v1766_v49 = vpop.eup %1765  ;;  %1630 = vmatprep.subr.bf16.mxu0 %v1703_v21 }
 0x409   : > { %v1024_v51 = vmul.f32 %v1766_v49, %v2193_v59 }
 0x40a   : > { %1615 = vmatmul.mubr.bf16.vlgmr.msra.gmra.mrb[16].mxu0 %v1042_v4 }
 0x40b   : > { %1618 = vmatprep.mubr.bf16.mxu0 %v1043_v23  ;;  %1040 = vst [vmem:[%s2207_s9 + $0x78] sm:$0xff] %v1024_v51  ;;  %1631 = vmatpush3.bf16.msra.mxu0 %v1703_v21  ;;  %v1048_v28 = vpack.c.bf16 %v1024_v51, %v1022_v39 }
 0x40c   : > { %v1768_v58 = vpop.eup %1767  ;;  %1632 = vmatprep.subr.bf16.mxu0 %v1704_v50 }
 0x40d   : > { %v1020_v35 = vmul.f32 %v1768_v58, %v2196_v52 }
 0x40f   : > { %1038 = vst [vmem:[%s2207_s9 + $0x68] sm:$0xff] %v1020_v35  ;;  %1633 = vmatpush3.bf16.msra.mxu0 %v1704_v50  ;;  %v1047_v46 = vpack.c.bf16 %v1020_v35, %v1018_v42  ;;  %s1773_s9 = sshll.u32 %s1835_s25, 4  ;;  %s1774_s9 = int_to_ptr.vmem [resolvable:$false] %s1773_s9 }
 0x410   : > { %s1775_s10 = scalar_lea.vmem %s1774_s9, 4096  ;;  %p1776_p0 = scmp.lt.s32.totalorder %s2271_s17, %s1774_s9 }
 0x411   : > { %p1777_p1 = scmp.lt.s32.totalorder %s1775_s10, %s1769_s29 }
 0x412   : > { %1619 = vmatmul.mubr.bf16.gmra.mrb[20].mxu0 %v1044_v24 }
 0x413   : > { %1622 = vmatprep.mubr.bf16.mxu0 %v1045_v25  ;;  %p1778_p2 = por %p1777_p1, %p1776_p0 }
 0x415   : > { %p1779_p3 = pnand %p1778_p2, %p1772_p13 }
 0x41a   : > { %1623 = vmatmul.mubr.bf16.gmra.mrb[24].mxu0 %v1046_v38 }
 0x41b   : > { %1626 = vmatprep.mubr.bf16.mxu0 %v1047_v46 }
 0x422   : > { %1627 = vmatmul.mubr.bf16.gmra.mrb[28].mxu0 %v1048_v28 }
 0x4dd   : > { %v1616_v29 = vpop.f32.mrb[16].mxu0 }
 0x4de   : > { %v1107_v45 = vpop.f32.mrb[17].mxu0 }
 0x4df   : > { %v1617_v56 = vpop.f32.mrb[18].mxu0 }
 0x4e0   : > { %v1171_v59 = vpack.c.bf16 %v1617_v56, %v1616_v29  ;;  %v1110_v57 = vpop.f32.mrb[19].mxu0 }
 0x4e1   : > { %v1170_v2 = vpack.c.bf16 %v1110_v57, %v1107_v45 }
 0x4e3   : > { %1634 = vmatprep.mubr.msk.bf16.mxu0 %vm311_vm0, %v1170_v2 }
 0x4e4   : > { %1635 = vmatmul.mubr.msk.bf16.vlgmr.msra.gmra.mrb[32].mxu0 %vm311_vm0, %v1171_v59 }
 0x4e5   : > { %v1620_v52 = vpop.f32.mrb[20].mxu0 }
 0x4e6   : > { %v1123_v60 = vpop.f32.mrb[21].mxu0 }
 0x4e7   : > { %v1621_v61 = vpop.f32.mrb[22].mxu0 }
 0x4e8   : > { %v1173_v62 = vpack.c.bf16 %v1621_v61, %v1620_v52  ;;  %v1126_v55 = vpop.f32.mrb[23].mxu0 }
 0x4e9   : > { %v1172_v63 = vpack.c.bf16 %v1126_v55, %v1123_v60 }
 0x4eb   : > { %1638 = vmatprep.mubr.msk.bf16.mxu0 %vm311_vm0, %v1172_v63 }
 0x4ec   : > { %1639 = vmatmul.mubr.msk.bf16.gmra.mrb[36].mxu0 %vm311_vm0, %v1173_v62 }
 0x4ed   : > { %v1624_v0 = vpop.f32.mrb[24].mxu0 }
 0x4ee   : > { %v1139_v1 = vpop.f32.mrb[25].mxu0 }
 0x4ef   : > { %v1625_v47 = vpop.f32.mrb[26].mxu0 }
 0x4f0   : > { %v1175_v3 = vpack.c.bf16 %v1625_v47, %v1624_v0  ;;  %v1142_v5 = vpop.f32.mrb[27].mxu0 }
 0x4f1   : > { %v1174_v54 = vpack.c.bf16 %v1142_v5, %v1139_v1 }
 0x4f3   : > { %1642 = vmatprep.mubr.msk.bf16.mxu0 %vm311_vm0, %v1174_v54 }
 0x4f4   : > { %1643 = vmatmul.mubr.msk.bf16.gmra.mrb[40].mxu0 %vm311_vm0, %v1175_v3 }
 0x4f5   : > { %v1628_v6 = vpop.f32.mrb[28].mxu0 }
 0x4f6   : > { %v1155_v53 = vpop.f32.mrb[29].mxu0 }
 0x4f7   : > { %v1629_v8 = vpop.f32.mrb[30].mxu0 }
 0x4f8   : > { %v1177_v9 = vpack.c.bf16 %v1629_v8, %v1628_v6  ;;  %v1158_v4 = vpop.f32.mrb[31].mxu0 }
 0x4f9   : > { %v1176_v7 = vpack.c.bf16 %v1158_v4, %v1155_v53 }
 0x4fb   : > { %1646 = vmatprep.mubr.msk.bf16.mxu0 %vm311_vm0, %v1176_v7 }
 0x4fc   : > { %1647 = vmatmul.mubr.msk.bf16.gmra.mrb[44].mxu0 %vm311_vm0, %v1177_v9 }
 0x4fd   : > { %1782 = shalt.err (!%p1779_p3)
}
 0x4fe   : > { %s1783_s28 = scalar_lea.hbm %s2269_s20, 2048  ;;  %s1787_s15 = scalar_lea.hbm %s2364_s6, 4096 }
 0x4ff   : > { %p1784_p4 = scmp.ne.s32.totalorder %s2269_s20, %s1783_s28  ;;  %p1788_p9 = scmp.lt.u32.totalorder %s2269_s20, %s2364_s6 }
 0x500   : > { %p1789_p10 = scmp.lt.u32.totalorder %s1787_s15, %s1783_s28  ;;  %p1791_p12 = scmp.lt.u32.totalorder %s1783_s28, %s2269_s20 }
 0x501   : > { %p1785_p7 = pnand %p1784_p4, %p1911_p5 }
 0x502   : > { %p1790_p11 = por %p1789_p10, %p1788_p9 }
 0x503   : > { %p1786_p8 = pneg %p1785_p7 }
 0x504   : > { %p1792_p13 = por %p1791_p12, %p1790_p11 }
 0x506   : > { %p1793_p0 = pnand %p1792_p13, %p1786_p8 }
 0x508   : > { %1796 = shalt.err (!%p1793_p0)
}
 0x509   : > { %s1836_s19 = smov 128   ;;  %s1837_s29 = smov 8   ;;  %v1475_v10 = vld [vmem:[%s2362_s4] ss:$0 sm:$0xff] }
 0x50a   : > { %1658 = dma.vmem_to_hbm [thread:$0]  (%p1911_p5), %s2271_s17, 2048, %s2269_s20, %s2275_s26, %s1836_s19, %s1836_s19, %s1837_s29  }
 0x50b   : > { %s2307_s28 = scalar_lea.vmem %s2363_s5, %s1491_s14 }
 0x5b7   : > { %v1636_v11 = vpop.f32.mrb[32].mxu0 }
 0x5b8   : > { %v1268_v12 = vadd.f32 %v1636_v11, %v1475_v10  ;;  %v1259_v13 = vpop.f32.mrb[33].mxu0 }
 0x5b9   : > { %v1260_v15 = vadd.f32 %v1475_v10, %v1259_v13  ;;  %v1637_v14 = vpop.f32.mrb[34].mxu0 }
 0x5ba   : > { %1324 = vst.msk [vmem:[%s2307_s28 + $0x10] sm:$0xff] %vm311_vm0, %v1268_v12  ;;  %v1271_v16 = vadd.f32 %v1637_v14, %v1475_v10  ;;  %v1262_v17 = vpop.f32.mrb[35].mxu0 }
 0x5bb   : > { %1322 = vst.msk [vmem:[%s2307_s28] sm:$0xff] %vm311_vm0, %v1260_v15  ;;  %v1263_v18 = vadd.f32 %v1475_v10, %v1262_v17 }
 0x5bc   : > { %1325 = vst.msk [vmem:[%s2307_s28 + $0x18] sm:$0xff] %vm311_vm0, %v1271_v16 }
 0x5bd   : > { %1323 = vst.msk [vmem:[%s2307_s28 + $0x8] sm:$0xff] %vm311_vm0, %v1263_v18 }
 0x5bf   : > { %v1640_v19 = vpop.f32.mrb[36].mxu0 }
 0x5c0   : > { %v1284_v20 = vadd.f32 %v1640_v19, %v1475_v10  ;;  %v1275_v22 = vpop.f32.mrb[37].mxu0 }
 0x5c1   : > { %v1276_v23 = vadd.f32 %v1475_v10, %v1275_v22  ;;  %v1641_v24 = vpop.f32.mrb[38].mxu0 }
 0x5c2   : > { %1328 = vst.msk [vmem:[%s2307_s28 + $0x30] sm:$0xff] %vm311_vm0, %v1284_v20  ;;  %v1287_v26 = vadd.f32 %v1641_v24, %v1475_v10  ;;  %v1278_v27 = vpop.f32.mrb[39].mxu0 }
 0x5c3   : > { %1326 = vst.msk [vmem:[%s2307_s28 + $0x20] sm:$0xff] %vm311_vm0, %v1276_v23  ;;  %v1279_v30 = vadd.f32 %v1475_v10, %v1278_v27 }
 0x5c4   : > { %1329 = vst.msk [vmem:[%s2307_s28 + $0x38] sm:$0xff] %vm311_vm0, %v1287_v26 }
 0x5c5   : > { %1327 = vst.msk [vmem:[%s2307_s28 + $0x28] sm:$0xff] %vm311_vm0, %v1279_v30 }
 0x5c7   : > { %v1644_v31 = vpop.f32.mrb[40].mxu0 }
 0x5c8   : > { %v1300_v32 = vadd.f32 %v1644_v31, %v1475_v10  ;;  %v1291_v33 = vpop.f32.mrb[41].mxu0 }
 0x5c9   : > { %v1292_v34 = vadd.f32 %v1475_v10, %v1291_v33  ;;  %v1645_v36 = vpop.f32.mrb[42].mxu0 }
 0x5ca   : > { %1332 = vst.msk [vmem:[%s2307_s28 + $0x50] sm:$0xff] %vm311_vm0, %v1300_v32  ;;  %v1303_v37 = vadd.f32 %v1645_v36, %v1475_v10  ;;  %v1294_v39 = vpop.f32.mrb[43].mxu0 }
 0x5cb   : > { %1330 = vst.msk [vmem:[%s2307_s28 + $0x40] sm:$0xff] %vm311_vm0, %v1292_v34  ;;  %v1295_v40 = vadd.f32 %v1475_v10, %v1294_v39 }
 0x5cc   : > { %1333 = vst.msk [vmem:[%s2307_s28 + $0x58] sm:$0xff] %vm311_vm0, %v1303_v37 }
 0x5cd   : > { %1331 = vst.msk [vmem:[%s2307_s28 + $0x48] sm:$0xff] %vm311_vm0, %v1295_v40 }
 0x5cf   : > { %v1648_v38 = vpop.f32.mrb[44].mxu0 }
 0x5d0   : > { %v1316_v41 = vadd.f32 %v1648_v38, %v1475_v10  ;;  %v1307_v42 = vpop.f32.mrb[45].mxu0 }
 0x5d1   : > { %v1308_v43 = vadd.f32 %v1475_v10, %v1307_v42  ;;  %v1649_v44 = vpop.f32.mrb[46].mxu0 }
 0x5d2   : > { %1336 = vst.msk [vmem:[%s2307_s28 + $0x70] sm:$0xff] %vm311_vm0, %v1316_v41  ;;  %v1319_v21 = vadd.f32 %v1649_v44, %v1475_v10  ;;  %v1310_v48 = vpop.f32.mrb[47].mxu0 }
 0x5d3   : > { %1334 = vst.msk [vmem:[%s2307_s28 + $0x60] sm:$0xff] %vm311_vm0, %v1308_v43  ;;  %v1311_v49 = vadd.f32 %v1475_v10, %v1310_v48 }
 0x5d4   : > { %1337 = vst.msk [vmem:[%s2307_s28 + $0x78] sm:$0xff] %vm311_vm0, %v1319_v21 }
 0x5d5   : > { %1335 = vst.msk [vmem:[%s2307_s28 + $0x68] sm:$0xff] %vm311_vm0, %v1311_v49 }
 0x5d6 PF: > { %p1664_p5 = scmp.ge.s32.totalorder %s1831_s24, 2  ;;  %s1383_s7 = sand.u32 1, %s1819_s21  }
 0x5d7   : > { %s1384_s13 = scalar_lea.sflag [#allocation3], %s1383_s7 }
 0x5d8   : > { %p1661_p1 = pnand %p1664_p5, %p1915_p6 }
 0x5da   : > { %1814 = dma.done.wait (!%p1661_p1), %s1384_s13, 2048  }
 0x5db   : > { %1816 = vsyncadd (!%p1661_p1), %s1384_s13, 4294965248  ;;  %p17_p2 = scmp.ge.s32.totalorder %s1898_s27, 4   ;;  %s2371_s21 = smov %s1823_s22 }
 0x5dc   : > { %s2372_s22 = smov %s1827_s23  ;;  %s2373_s23 = smov %s1909_s30 }
 0x5dd   : > { %s2374_s24 = smov %s1898_s27  ;;  %19 = sbr.rel (!%p17_p2) target bundleno = 3 (0x3), region = 87 }
 0x5e4   :  { %1389 = vsyncpa [#allocation3], 1 }
 0x5e5   :  { %1391 = vsyncpa [#allocation3 + $0x1], 1 }

</bundles_post_ra>
